<compile_context>
chip_gen: v5e
topology: v5e:2x2
jax: 0.10.0
libtpu: 0.0.40
codegen_flags: <defaults>
</compile_context>

<pallas_src>
import functools
import math

import jax
import jax.numpy as jnp
from jax.experimental import pallas as pl
from jax.experimental.pallas import tpu as pltpu


def _temporal_embedding_kernel(x_ref, tbl_ref, out_ref, *, k):
    # x_ref:   (tile_r, k)     float32  -- k consecutive time values per output row
    # tbl_ref: (k+1, k*E)      float32  -- rows 0..k-1: freq expansion (zero elsewhere),
    #                                       row  k    : phase (0 / pi/2 interleave, tiled)
    # out_ref: (tile_r, k*E)   out_dtype
    x = x_ref[...]                                   # (tile_r, k)
    tbl = tbl_ref[...]                               # (k+1, F)
    arg = tbl[k:k + 1, :]                            # (1, F) phase row
    for j in range(k):
        # Exactly one nonzero table entry per lane -> exact f32 result:
        #   arg[r, j*E+e] = x[r, j] * freq[e] + phase[e]
        arg = arg + x[:, j:j + 1] * tbl[j:j + 1, :]  # (tile_r,1)*(1,F) -> (tile_r,F)
    # cos(a) == sin(a + pi/2): single transcendental per output element.
    out_ref[...] = jnp.sin(arg).astype(out_ref.dtype)
    # TODO(synk): training-mode dropout (p_drop) omitted; eval-mode dropout is identity.


def temporal_embedding(x, n_embd, *, out_dtype=jnp.float32, tile_rows=None):
    """x: (B, T) times -> (B, T, n_embd) out_dtype (eval-mode TemporalEmbedding)."""
    B, T = x.shape
    E = int(n_embd)
    assert E % 2 == 0, "n_embd must be even (sin/cos interleave)"
    x = x.astype(jnp.float32)

    # Fold k time steps into the last dim so the stored last dim is a multiple of 128.
    if E % 128 == 0:
        k = 1
    else:
        k = ((E * 128) // math.gcd(E, 128)) // E    # lcm(E, 128) / E
        if k > T or T % k != 0:
            k = 1                                    # fall back to masked stores
    F = k * E
    rows = (B * T) // k

    # Tiny merged freq/phase table (k+1, F), computed once on the XLA side.
    e_idx = jnp.arange(E, dtype=jnp.int32)
    even_base = (e_idx - (e_idx % 2)).astype(jnp.float32)            # 0,0,2,2,4,4,...
    freq = jnp.exp(even_base * (-(math.log(10000.0) / float(E))))    # (E,)
    phase = (e_idx % 2).astype(jnp.float32) * (math.pi / 2.0)        # (E,)
    w = (jnp.eye(k, dtype=jnp.float32)[:, :, None] * freq[None, None, :]).reshape(k, F)
    tbl = jnp.concatenate([w, jnp.tile(phase, k)[None, :]], axis=0)  # (k+1, F)

    x2 = x.reshape(rows, k)
    out_itemsize = jnp.dtype(out_dtype).itemsize

    # Generation-aware VMEM budget (v5e/v6e: 128 MiB physical, v7x: 64 MiB).
    try:
        vmem_cap = int(pltpu.get_tpu_info().vmem_capacity_bytes)
    except Exception:
        vmem_cap = 128 * 1024 * 1024
    vmem_limit = min(64 * 1024 * 1024, vmem_cap // 2)        # 64 MiB (v5e/v6e), 32 MiB (v7x)
    block_budget = min(24 * 1024 * 1024, vmem_limit // 2)    # total live double-buffered blocks

    if tile_rows is None:
        per_row = 2 * (F * out_itemsize + k * 4)             # double-buffered out + x blocks
        tile_rows = max(8, (block_budget // per_row) // 8 * 8)
        if rows >= 16:
            # Keep >= 2 grid steps so v7x can shard the "parallel" axis over both TCs.
            tile_rows = min(tile_rows, max(8, (pl.cdiv(rows, 2) // 8) * 8))
    tile_rows = max(1, min(int(tile_rows), rows))
    if rows < 8:
        tile_rows = rows                                     # block == full dim (layout rule)
    # NOTE: for extremely large E (> ~1M f32 per 8 rows) the F axis would also need tiling;
    # typical n_embd values stay far below that.

    grid = (pl.cdiv(rows, tile_rows),)
    cost = pl.CostEstimate(
        flops=(2 * k + 1) * rows * F,
        transcendentals=rows * F,
        bytes_accessed=rows * k * 4 + (k + 1) * F * 4 + rows * F * out_itemsize,
    )

    out2 = pl.pallas_call(
        functools.partial(_temporal_embedding_kernel, k=k),
        out_shape=jax.ShapeDtypeStruct((rows, F), out_dtype),
        grid=grid,
        in_specs=[
            pl.BlockSpec((tile_rows, k), lambda i: (i, 0)),
            pl.BlockSpec((k + 1, F), lambda i: (0, 0)),
        ],
        out_specs=pl.BlockSpec((tile_rows, F), lambda i: (i, 0)),
        compiler_params=pltpu.CompilerParams(
            dimension_semantics=("parallel",),
            vmem_limit_bytes=vmem_limit,
        ),
        cost_estimate=cost,
    )(x2, tbl)

    # (rows, k*E) -> (B, T, E): free row-major reshape.
    return out2.reshape(B, T, E)


def temporal_embedding_ref(x, n_embd):
    """Pure-JAX reference mirroring the PyTorch forward (eval mode)."""
    div_term = jnp.exp(jnp.arange(0, n_embd, 2, dtype=jnp.float32)
                       * -(math.log(10000.0) / n_embd))            # (E/2,)
    arg = x[:, :, None] * div_term                                   # (B, T, E/2)
    out = jnp.stack([jnp.sin(arg), jnp.cos(arg)], axis=-1)
    return out.reshape(x.shape[0], x.shape[1], n_embd)


if __name__ == "__main__":
    B, T, n_embd = 2, 8, 32
    p_drop = 0.1          # dropout prob (identity at inference)
    max_len = 1200        # upper bound on T in the original module
    assert T <= max_len

    key = jax.random.PRNGKey(0)
    # "time" values, e.g. spike times in seconds.
    x = jax.random.uniform(key, (B, T), dtype=jnp.float32) * 10.0

    out = jax.block_until_ready(temporal_embedding(x, n_embd))
    ref = temporal_embedding_ref(x, n_embd)
    assert out.shape == (B, T, n_embd)
    assert jnp.allclose(out, ref, atol=1e-5, rtol=1e-5)

    # bf16 store path (halves HBM writeback for bandwidth-bound callers; math stays f32).
    out_bf16 = jax.block_until_ready(
        temporal_embedding(x, n_embd, out_dtype=jnp.bfloat16))
    assert jnp.allclose(out_bf16.astype(jnp.float32), ref, atol=2e-2, rtol=2e-2)

    print("KERNEL_OK")
</pallas_src>

<mosaic_0001>
module attributes {stable_mosaic.version = 11 : i64} {
  func.func @_temporal_embedding_kernel(%arg0: i32, %arg1: memref<4x4xf32, #tpu.memory_space<vmem>>, %arg2: memref<5x128xf32, #tpu.memory_space<vmem>>, %arg3: memref<4x128xf32, #tpu.memory_space<vmem>>) attributes {dimension_semantics = [#tpu.dimension_semantics<parallel>], iteration_bounds = array<i64: 1>, scalar_prefetch = 0 : i64, scratch_operands = 0 : i64, tpu.core_type = #tpu.core_type<tc>, window_params = [{transform_indices = @transform_0, window_bounds = array<i64: 4, 4>}, {pipeline_mode = #tpu.pipeline_mode<synchronous>, transform_indices = @transform_1, window_bounds = array<i64: 5, 128>}, {transform_indices = @transform_2, window_bounds = array<i64: 4, 128>}]} {
    %c0 = arith.constant 0 : index
    %c0_0 = arith.constant 0 : index
    %0 = vector.load %arg1[%c0, %c0_0] : memref<4x4xf32, #tpu.memory_space<vmem>>, vector<4x4xf32>
    %c0_1 = arith.constant 0 : index
    %c0_2 = arith.constant 0 : index
    %1 = vector.load %arg2[%c0_1, %c0_2] : memref<5x128xf32, #tpu.memory_space<vmem>>, vector<5x128xf32>
    %2 = vector.extract_strided_slice %1 {offsets = [4, 0], sizes = [1, 128], strides = [1, 1]} : vector<5x128xf32> to vector<1x128xf32>
    %3 = vector.extract_strided_slice %0 {offsets = [0, 0], sizes = [4, 1], strides = [1, 1]} : vector<4x4xf32> to vector<4x1xf32>
    %4 = vector.extract_strided_slice %1 {offsets = [0, 0], sizes = [1, 128], strides = [1, 1]} : vector<5x128xf32> to vector<1x128xf32>
    %5 = vector.broadcast %3 : vector<4x1xf32> to vector<4x128xf32>
    %6 = vector.broadcast %4 : vector<1x128xf32> to vector<4x128xf32>
    %7 = arith.mulf %5, %6 : vector<4x128xf32>
    %8 = vector.broadcast %2 : vector<1x128xf32> to vector<4x128xf32>
    %9 = arith.addf %8, %7 : vector<4x128xf32>
    %10 = vector.extract_strided_slice %0 {offsets = [0, 1], sizes = [4, 1], strides = [1, 1]} : vector<4x4xf32> to vector<4x1xf32>
    %11 = vector.extract_strided_slice %1 {offsets = [1, 0], sizes = [1, 128], strides = [1, 1]} : vector<5x128xf32> to vector<1x128xf32>
    %12 = vector.broadcast %10 : vector<4x1xf32> to vector<4x128xf32>
    %13 = vector.broadcast %11 : vector<1x128xf32> to vector<4x128xf32>
    %14 = arith.mulf %12, %13 : vector<4x128xf32>
    %15 = arith.addf %9, %14 : vector<4x128xf32>
    %16 = vector.extract_strided_slice %0 {offsets = [0, 2], sizes = [4, 1], strides = [1, 1]} : vector<4x4xf32> to vector<4x1xf32>
    %17 = vector.extract_strided_slice %1 {offsets = [2, 0], sizes = [1, 128], strides = [1, 1]} : vector<5x128xf32> to vector<1x128xf32>
    %18 = vector.broadcast %16 : vector<4x1xf32> to vector<4x128xf32>
    %19 = vector.broadcast %17 : vector<1x128xf32> to vector<4x128xf32>
    %20 = arith.mulf %18, %19 : vector<4x128xf32>
    %21 = arith.addf %15, %20 : vector<4x128xf32>
    %22 = vector.extract_strided_slice %0 {offsets = [0, 3], sizes = [4, 1], strides = [1, 1]} : vector<4x4xf32> to vector<4x1xf32>
    %23 = vector.extract_strided_slice %1 {offsets = [3, 0], sizes = [1, 128], strides = [1, 1]} : vector<5x128xf32> to vector<1x128xf32>
    %24 = vector.broadcast %22 : vector<4x1xf32> to vector<4x128xf32>
    %25 = vector.broadcast %23 : vector<1x128xf32> to vector<4x128xf32>
    %26 = arith.mulf %24, %25 : vector<4x128xf32>
    %27 = arith.addf %21, %26 : vector<4x128xf32>
    %28 = math.sin %27 : vector<4x128xf32>
    %c0_3 = arith.constant 0 : index
    %c0_4 = arith.constant 0 : index
    %29 = vector.load %arg3[%c0_3, %c0_4] : memref<4x128xf32, #tpu.memory_space<vmem>>, vector<4x128xf32>
    tpu.vector_store %arg3[%c0_3, %c0_4], %28 {strides = array<i32>} : memref<4x128xf32, #tpu.memory_space<vmem>>, vector<4x128xf32>,
    return
  }
  func.func @transform_0(%arg0: i32) -> (i32, i32) {
    %c0_i32 = arith.constant 0 : i32
    %c0_i32_0 = arith.constant 0 : i32
    return %arg0, %c0_i32 : i32, i32
  }
  func.func @transform_1(%arg0: i32) -> (i32, i32) {
    %c0_i32 = arith.constant 0 : i32
    %c0_i32_0 = arith.constant 0 : i32
    %c0_i32_1 = arith.constant 0 : i32
    return %c0_i32, %c0_i32_0 : i32, i32
  }
  func.func @transform_2(%arg0: i32) -> (i32, i32) {
    %c0_i32 = arith.constant 0 : i32
    %c0_i32_0 = arith.constant 0 : i32
    return %arg0, %c0_i32 : i32, i32
  }
}

</mosaic_0001>

<bundles_post_ra>
// kernel: tpu_custom_call.1
= control target key start
LH: loop header
LB: loop body
LE: loop exit
PB: predicated region body
PF: predicated region fallthrough
CT: control target
= control target key end

     0   :  { %7 = vsyncpa [#allocation3], 0  ;;  %s443_s0 = inlined_call_operand.hbm [shape: f32[4,4], index: 0, kind: input, shape index: {}]   ;;  %s444_s1 = inlined_call_operand.hbm [shape: f32[5,128], index: 1, kind: input, shape index: {}]   ;;  %s445_s2 = inlined_call_operand.hbm [shape: f32[4,128], index: 2, kind: output, shape index: {}]  }
   0x1   :  { %8 = vsyncpa [#allocation6], 0 }
   0x2   :  { %9 = vsyncpa [#allocation4], 0  ;;  %s15_s11 = sshll.u32 %s443_s0, 4  ;;  %s345_s12 = smov [#allocation2]   ;;  %s16_s11 = int_to_ptr.hbm [resolvable:$true] %s15_s11 }
   0x3   :  { %s17_s13 = sshll.u32 %s345_s12, 4  ;;  %s26_s16 = sshll.u32 %s444_s1, 4  ;;  %s18_s13 = int_to_ptr.vmem [resolvable:$true] %s17_s13  ;;  %s27_s16 = int_to_ptr.hbm [resolvable:$true] %s26_s16 }
   0x4   :  { %20 = dma.hbm_to_vmem [thread:$0]  %s16_s11, 64, %s18_s13, [#allocation3]  }
   0x5   :  { %s346_s17 = smov [#allocation5]  }
   0x6   :  { %s28_s18 = sshll.u32 %s346_s17, 4  ;;  %s29_s18 = int_to_ptr.vmem [resolvable:$true] %s28_s18 }
   0x7   :  { %31 = dma.hbm_to_vmem [thread:$0]  %s27_s16, 128, %s29_s18, [#allocation6]  }
   0x8   :  { %339 = dma.done.wait [#allocation3], 64  }
   0x9   :  { %340 = vsyncadd [#allocation3], 4294967232 }
   0xa   :  { %341 = dma.done.wait [#allocation6], 128  }
   0xb   :  { %342 = vsyncadd [#allocation6], 4294967168  ;;  %v347_v0 = vmov 0   ;;  %v348_v1 = vmov 2   ;;  %v40_v2 = vld [vmem:[#allocation2] sm:$0xf] }
   0xc   :  { %262 = vset.pattern.permute.xlu0 %v347_v0  ;;  %264 = vset.pattern.permute.xlu1 %v348_v1  ;;  %v349_v3 = vmov 1   ;;  %v350_v4 = vmov 3   ;;  %v41_v5 = vld [vmem:[#allocation5] sm:$0x1f]  ;;  %v351_v34 = vmov 683565275  }
   0xd   :  { %44 = vperm.xlu0 %262, %v40_v2   ;;  %59 = vperm.xlu1 %264, %v40_v2   ;;  %v47_v8 = vperm.slane %v41_v5, 0  ;;  %v49_v9 = vperm.slane %v41_v5, 4  ;;  %v55_v11 = vperm.slane %v41_v5, 1  ;;  %v62_v12 = vperm.slane %v41_v5, 2  ;;  %s357_s0 = smov [#allocation7]   ;;  %s235_s21 = sshll.u32 %s445_s2, 4  ;;  %s236_s21 = int_to_ptr.hbm [resolvable:$true] %s235_s21 }
   0xe   :  { %v69_v13 = vperm.slane %v41_v5, 3  ;;  %v352_v36 = vmov 2475754826   ;;  %v353_v39 = vmov 2131351028   ;;  %s233_s1 = sshll.u32 %s357_s0, 4  ;;  %s234_s1 = int_to_ptr.vmem [resolvable:$true] %s233_s1 }
   0xf   :  { %v354_v42 = vmov 2102212464   ;;  %v355_v45 = vmov 920167782   ;;  %v356_v48 = vmov 1326507024  }
  0x15   :  { %263 = vset.pattern.permute.xlu0 %v349_v3  ;;  %265 = vset.pattern.permute.xlu1 %v350_v4 }
  0x16   :  { %52 = vperm.xlu0 %263, %v40_v2   ;;  %66 = vperm.xlu1 %265, %v40_v2  }
  0x1e   :  { %266 = vset.pattern.permute.xlu0 %v350_v4 }
  0x7f   :  { %v45_v6 = vpop.permute.xlu0 %44  ;;  %v60_v7 = vpop.permute.xlu1 %59 }
  0x80   :  { %v48_v10 = vmul.f32 %v47_v8, %v45_v6  ;;  %v63_v18 = vmul.f32 %v62_v12, %v60_v7 }
  0x82   :  { %v50_v16 = vadd.f32 %v49_v9, %v48_v10 }
  0x88   :  { %v53_v14 = vpop.permute.xlu0 %52  ;;  %v67_v15 = vpop.permute.xlu1 %66 }
  0x89   :  { %v56_v17 = vmul.f32 %v55_v11, %v53_v14  ;;  %v70_v20 = vmul.f32 %v69_v13, %v67_v15 }
  0x8b   :  { %v57_v19 = vadd.f32 %v56_v17, %v50_v16 }
  0x8d   :  { %v64_v21 = vadd.f32 %v63_v18, %v57_v19 }
  0x8f   :  { %v380_v22 = vadd.f32 %v70_v20, %v64_v21 }
  0x91   :  { %v75_v23 = vand.u32 2139095040, %v380_v22  ;;  %v72_v26 = vand.u32 2147483647, %v380_v22  ;;  %vm74_vm12 = vcmp.lt.s32.totalorder %v380_v22, 0 }
  0x93   :  { %v76_v24 = vshrl.u32 %v75_v23, 23  ;;  %v79_v28 = vand.u32 8388607, %v72_v26  ;;  %vm73_vm13 = vcmp.le.f32.partialorder %v72_v26, 0.7853982 }
  0x95   :  { %v246_v25 = vadd.s32 4294967169, %v76_v24  ;;  %v80_v32 = vor.u32 8388608, %v79_v28 }
  0x97   :  { %v82_v27 = vadd.s32 1, %v246_v25  ;;  %v397_v55 = vshll.u32 %v80_v32, 8 }
  0x99   :  { %vm83_vm0 = vcmp.gt.s32.totalorder %v82_v27, 0  ;;  %v121_v1 = vand.u32 65535, %v397_v55  ;;  %v122_v6 = vshrl.u32 %v397_v55, 16 }
  0x9a   :  { %v84_v29 = vsel %vm83_vm0, %v82_v27, 0 }
  0x9b   :  { %v86_v30 = vand.u32 31, %v84_v29  ;;  %v388_v33 = vshrl.u32 %v84_v29, 5 }
  0x9d   :  { %v386_v31 = vsub.s32 32, %v86_v30  ;;  %v89_v35 = vshll.u32 %v351_v34, %v86_v30  ;;  %v92_v37 = vshll.u32 %v352_v36, %v86_v30  ;;  %v95_v41 = vshll.u32 %v353_v39, %v86_v30 }
  0x9e   :  { %v98_v44 = vshll.u32 %v354_v42, %v86_v30  ;;  %v101_v47 = vshll.u32 %v355_v45, %v86_v30  ;;  %vm104_vm1 = vcmp.lt.s32.totalorder %v388_v33, 1  ;;  %vm107_vm2 = vcmp.lt.s32.totalorder %v388_v33, 4 }
  0x9f   :  { %v90_v38 = vshrl.u32 %v352_v36, %v386_v31  ;;  %v93_v40 = vshrl.u32 %v353_v39, %v386_v31  ;;  %v96_v43 = vshrl.u32 %v354_v42, %v386_v31  ;;  %v99_v46 = vshrl.u32 %v355_v45, %v386_v31 }
  0xa0   :  { %v102_v49 = vshrl.u32 %v356_v48, %v386_v31  ;;  %vm106_vm3 = vcmp.lt.s32.totalorder %v388_v33, 3  ;;  %vm105_vm4 = vcmp.lt.s32.totalorder %v388_v33, 2  ;;  %v88_v28 = vshrl.u32 %v351_v34, %v386_v31 }
  0xa1   :  { %v91_v50 = vor.u32 %v90_v38, %v89_v35  ;;  %v94_v51 = vor.u32 %v93_v40, %v92_v37  ;;  %v97_v52 = vor.u32 %v96_v43, %v95_v41  ;;  %v100_v53 = vor.u32 %v99_v46, %v98_v44 }
  0xa2   :  { %v103_v54 = vor.u32 %v102_v49, %v101_v47 }
  0xa3   :  { %v112_v56 = vsel %vm104_vm1, %v91_v50, %v94_v51  ;;  %v116_v57 = vsel %vm104_vm1, %v94_v51, %v97_v52  ;;  %v113_v58 = vsel %vm107_vm2, %v100_v53, 920167782  ;;  %v109_v21 = vsel %vm107_vm2, %v97_v52, 2102212464 }
  0xa4   :  { %v117_v59 = vsel %vm107_vm2, %v103_v54, 1326507024  ;;  %v114_v60 = vsel %vm106_vm3, %v97_v52, %v113_v58  ;;  %v108_v38 = vsel %vm104_vm1, %v88_v28, %v91_v50  ;;  %v110_v39 = vsel %vm106_vm3, %v94_v51, %v109_v21 }
  0xa5   :  { %v118_v61 = vsel %vm106_vm3, %v100_v53, %v117_v59  ;;  %v115_v62 = vsel %vm105_vm4, %v112_v56, %v114_v60  ;;  %v111_v31 = vsel %vm105_vm4, %v108_v38, %v110_v39  ;;  %vm215_vm1 = vweird.f32 %v380_v22 }
  0xa6   :  { %v119_v63 = vsel %vm105_vm4, %v116_v57, %v118_v61  ;;  %v145_v4 = vand.u32 65535, %v115_v62  ;;  %v146_v5 = vshrl.u32 %v115_v62, 16  ;;  %v165_v46 = vmul.u32 %v397_v55, %v111_v31 }
  0xa7   :  { %v123_v2 = vand.u32 65535, %v119_v63  ;;  %v124_v3 = vshrl.u32 %v119_v63, 16 }
  0xa8   :  { %v148_v8 = vmul.u32 %v146_v5, %v121_v1  ;;  %v149_v10 = vmul.u32 %v145_v4, %v122_v6  ;;  %v147_v13 = vmul.u32 %v145_v4, %v121_v1  ;;  %v150_v16 = vmul.u32 %v146_v5, %v122_v6 }
  0xa9   :  { %v126_v7 = vmul.u32 %v124_v3, %v121_v1  ;;  %v127_v9 = vmul.u32 %v123_v2, %v122_v6  ;;  %v125_v11 = vmul.u32 %v123_v2, %v121_v1  ;;  %v128_v15 = vmul.u32 %v124_v3, %v122_v6 }
  0xaa   :  { %v151_v14 = vshll.u32 %v148_v8, 16  ;;  %v153_v18 = vshll.u32 %v149_v10, 16  ;;  %v152_v36 = vshrl.u32 %v148_v8, 16  ;;  %v154_v42 = vshrl.u32 %v149_v10, 16 }
  0xab   :  { %v129_v12 = vshll.u32 %v126_v7, 16  ;;  %v131_v17 = vshll.u32 %v127_v9, 16  ;;  %v130_v32 = vshrl.u32 %v126_v7, 16  ;;  %v132_v40 = vshrl.u32 %v127_v9, 16 }
  0xac   :  { %vm155_vm6 = vc.u32 %v147_v13, %v151_v14  ;;  %v157_v20 = vadd.s32 %v151_v14, %v147_v13 }
  0xad   :  { %vm133_vm5 = vc.u32 %v125_v11, %v129_v12  ;;  %v135_v19 = vadd.s32 %v129_v12, %v125_v11  ;;  %v156_v24 = vsel %vm155_vm6, 1, %v347_v0 }
  0xae   :  { %v134_v23 = vsel %vm133_vm5, 1, %v347_v0  ;;  %v158_v27 = vadd.s32 %v156_v24, %v150_v16  ;;  %vm159_vm8 = vc.u32 %v157_v20, %v153_v18  ;;  %v161_v44 = vadd.s32 %v157_v20, %v153_v18 }
  0xaf   :  { %v136_v25 = vadd.s32 %v134_v23, %v128_v15  ;;  %vm137_vm7 = vc.u32 %v135_v19, %v131_v17  ;;  %v160_v30 = vsel %vm159_vm8, 1, %v347_v0 }
  0xb0   :  { %v138_v29 = vsel %vm137_vm7, 1, %v347_v0  ;;  %v162_v37 = vadd.s32 %v160_v30, %v158_v27 }
  0xb1   :  { %v140_v35 = vadd.s32 %v138_v29, %v136_v25 }
  0xb2   :  { %v163_v43 = vadd.s32 %v162_v37, %v152_v36 }
  0xb3   :  { %v141_v41 = vadd.s32 %v140_v35, %v130_v32 }
  0xb4   :  { %v164_v0 = vadd.s32 %v163_v43, %v154_v42 }
  0xb5   :  { %v142_v34 = vadd.s32 %v141_v41, %v132_v40 }
  0xb6   :  { %v168_v45 = vadd.s32 1, %v164_v0 }
  0xb7   :  { %vm167_vm9 = vc.u32 %v142_v34, %v161_v44  ;;  %v166_v58 = vadd.s32 %v161_v44, %v142_v34 }
  0xb8   :  { %v169_v47 = vsel %vm167_vm9, %v168_v45, %v164_v0 }
  0xb9   :  { %v170_v48 = vadd.s32 %v169_v47, %v165_v46 }
  0xbb   :  { %v171_v49 = vadd.s32 536870912, %v170_v48 }
  0xbd   :  { %v172_v50 = vshrl.u32 %v171_v49, 30 }
  0xbf   :  { %v173_v52 = vshll.u32 %v172_v50, 30  ;;  %v196_v8 = vsub.s32 4, %v172_v50 }
  0xc1   :  { %v174_v51 = vsub.s32 %v170_v48, %v173_v52  ;;  %v197_v13 = vsel %vm74_vm12, %v196_v8, %v172_v50 }
  0xc2   :  { %v199_v16 = vsel %vm73_vm13, 0, %v197_v13 }
  0xc3   :  { %vm175_vm10 = vcmp.lt.s32.totalorder %v174_v51, 0  ;;  %v176_v53 = vsub.s32 0, %v174_v51  ;;  %v216_v21 = vadd.s32 3, %v199_v16 }
  0xc5   :  { %v177_v54 = vsel %vm175_vm10, %v176_v53, %v174_v51  ;;  %v217_v27 = vand.u32 3, %v216_v21 }
  0xc6   :  { %v178_v56 = vclz %v177_v54 }
  0xc7   :  { %vm219_vm14 = vcmp.eq.s32.totalorder %v217_v27, 0  ;;  %vm222_vm15 = vcmp.eq.s32.totalorder %v217_v27, 2  ;;  %vm218_vm0 = vcmp.lt.s32.totalorder %v217_v27, 2 }
  0xc8   :  { %v247_v57 = vadd.s32 4294967294, %v178_v56 }
  0xca   :  { %vm248_vm11 = vcmp.lt.s32.totalorder %v247_v57, 0 }
  0xcb   :  { %v181_v33 = vsel %vm248_vm11, 0, %v247_v57 }
  0xcc   :  { %v182_v59 = vsub.s32 32, %v181_v33  ;;  %v186_v60 = vsub.s32 4294967266, %v181_v33  ;;  %v183_v61 = vshll.u32 %v174_v51, %v181_v33 }
  0xce   :  { %v184_v62 = vshrl.u32 %v166_v58, %v182_v59  ;;  %v187_v63 = vadd.s32 127, %v186_v60 }
  0xd0   :  { %v185_v55 = vor.u32 %v184_v62, %v183_v61  ;;  %v188_v1 = vshll.u32 %v187_v63, 23 }
  0xd2   :  { %v189_v2 = vor.u32 4788187, %v188_v1  ;;  %v192_v4 = vcvt.s32.f32 %v185_v55 }
  0xd4   :  { %v190_v3 = vand.u32 2147483647, %v189_v2 }
  0xd6   :  { %v193_v5 = vmul.f32 %v192_v4, %v190_v3 }
  0xd8   :  { %v194_v6 = vxor.u32 2147483648, %v193_v5 }
  0xda   :  { %v195_v7 = vsel %vm74_vm12, %v194_v6, %v193_v5 }
  0xdb   :  { %v198_v9 = vsel %vm73_vm13, %v380_v22, %v195_v7 }
  0xdc   :  { %v200_v10 = vmul.f32 %v198_v9, %v198_v9 }
  0xde   :  { %v201_v11 = vmul.f32 -0.001358992, %v200_v10  ;;  %v208_v12 = vmul.f32 -0.00019511016, %v200_v10 }
  0xe0   :  { %v202_v14 = vadd.f32 0.041655596, %v201_v11  ;;  %v209_v15 = vadd.f32 0.008332121, %v208_v12 }
  0xe2   :  { %v203_v17 = vmul.f32 %v202_v14, %v200_v10  ;;  %v210_v18 = vmul.f32 %v209_v15, %v200_v10 }
  0xe4   :  { %v204_v19 = vadd.f32 -0.4999988, %v203_v17  ;;  %v211_v20 = vadd.f32 -0.16666654, %v210_v18 }
  0xe6   :  { %v205_v23 = vmul.f32 %v204_v19, %v200_v10  ;;  %v212_v24 = vmul.f32 %v211_v20, %v200_v10 }
  0xe8   :  { %v206_v25 = vadd.f32 1.0, %v205_v23  ;;  %v213_v26 = vadd.f32 1.0, %v212_v24 }
  0xea   :  { %v214_v28 = vmul.f32 %v213_v26, %v198_v9  ;;  %v223_v29 = vxor.u32 2147483648, %v206_v25 }
  0xec   :  { %v220_v30 = vxor.u32 2147483648, %v214_v28  ;;  %v224_v35 = vsel %vm222_vm15, %v223_v29, %v214_v28 }
  0xee   :  { %v221_v32 = vsel %vm219_vm14, %v206_v25, %v220_v30 }
  0xef   :  { %v225_v36 = vsel %vm218_vm0, %v221_v32, %v224_v35 }
  0xf0   :  { %v226_v37 = vsel %vm215_vm1, nan, %v225_v36 }
  0xf1   :  { %227 = vst [vmem:[#allocation7] sm:$0xf] %v226_v37 }
  0xf2   :  { %238 = dma.vmem_to_hbm [thread:$0]  %s234_s1, 64, %s236_s21, [#allocation4]  }
  0xf3   :  { %343 = dma.done.wait [#allocation4], 64  }
  0xf4   :  { %344 = vsyncadd [#allocation4], 4294967232 }
  0xf5   :  { %243 = vsyncpa [#allocation3], 1 }
  0xf6   :  { %244 = vsyncpa [#allocation6], 1 }
  0xf7   :  { %245 = vsyncpa [#allocation4], 1 }

</bundles_post_ra>
